<compile_context>
chip_gen: v5e
topology: v5e:2x2
jax: 0.10.0
libtpu: 0.0.40
codegen_flags: <defaults>
</compile_context>

<pallas_src>
import functools

import jax
import jax.numpy as jnp
from jax.experimental import pallas as pl
from jax.experimental.pallas import tpu as pltpu


def _round_up(x, m):
    return (x + m - 1) // m * m


def _fused_mlp_kernel(x_ref, *refs, n_layers, compute_dtype):
    """relu(flatten(x)) -> [Linear + ReLU]*(n-1) -> Linear, all in one body."""
    o_ref = refs[-1]
    wb_refs = refs[:-1]

    # ReLU on the flattened input (quirk of Flatten sitting in layers[:-1]).
    h = jnp.maximum(x_ref[...], 0.0)

    for i in range(n_layers):
        w = wb_refs[2 * i][...]
        b = wb_refs[2 * i + 1][...]  # (1, N_i) -> broadcasts over rows, f32
        y = jnp.dot(h.astype(compute_dtype), w.astype(compute_dtype),
                    preferred_element_type=jnp.float32)
        y = y + b
        if i < n_layers - 1:
            y = jnp.maximum(y, 0.0)
        h = y

    o_ref[...] = h.astype(o_ref.dtype)


def network_forward(x_nchw, params, *, compute_dtype=jnp.float32, tm=128):
    """Full Network.forward: Flatten -> ReLU -> [Linear+ReLU]* -> Linear.

    One fused pallas_call. On v6e/v7x pass compute_dtype=jnp.bfloat16 for
    bf16-in / f32-accumulate MXU throughput; keep f32 on v5e / for exactness.
    """
    n = x_nchw.shape[0]
    x = x_nchw.reshape(n, -1).astype(jnp.float32)  # nn.Flatten (row-major)
    k_in = x.shape[1]
    n_layers = len(params)
    out_features = params[-1][1].shape[0]

    # --- batch padding / tiling (sublane-dense, M-tiled for megacore) -------
    tm_eff = min(tm, _round_up(n, 8))
    m_pad = _round_up(n, tm_eff)
    if m_pad != n:
        x = jnp.pad(x, ((0, m_pad - n), (0, 0)))

    # --- lane-dense final output (pad N=1 -> 128, slice outside) ------------
    n_pad = _round_up(out_features, 128)

    flat_inputs = [x]
    in_specs = [pl.BlockSpec((tm_eff, k_in), lambda i: (i, 0))]
    flops = 0
    bytes_accessed = x.size * 4
    for idx, (w, b) in enumerate(params):
        w = w.astype(jnp.float32)
        b = b.astype(jnp.float32)
        if idx == n_layers - 1 and n_pad != out_features:
            w = jnp.pad(w, ((0, 0), (0, n_pad - out_features)))
            b = jnp.pad(b, ((0, n_pad - out_features),))
        b2 = b.reshape(1, -1)
        flat_inputs += [w, b2]
        # Full-array blocks, constant index_map -> weights stay VMEM-resident.
        in_specs += [
            pl.BlockSpec(w.shape, lambda i: (0, 0)),
            pl.BlockSpec(b2.shape, lambda i: (0, 0)),
        ]
        flops += 2 * m_pad * w.shape[0] * w.shape[1]
        bytes_accessed += (w.size + b2.size) * 4
    bytes_accessed += m_pad * n_pad * 4

    kernel = functools.partial(
        _fused_mlp_kernel, n_layers=n_layers, compute_dtype=compute_dtype)

    out = pl.pallas_call(
        kernel,
        out_shape=jax.ShapeDtypeStruct((m_pad, n_pad), jnp.float32),
        grid=(m_pad // tm_eff,),
        in_specs=in_specs,
        out_specs=pl.BlockSpec((tm_eff, n_pad), lambda i: (i, 0)),
        compiler_params=pltpu.CompilerParams(
            # Batch tiles are independent -> shard across v7x's 2 TensorCores.
            # Working set is << default scoped VMEM on v5e/v6e/v7x, so no
            # explicit vmem_limit_bytes is needed.
            dimension_semantics=("parallel",),
        ),
        cost_estimate=pl.CostEstimate(
            flops=flops, transcendentals=0, bytes_accessed=bytes_accessed),
    )(*flat_inputs)

    # Drop batch padding and the lane padding of the final layer.
    return out[:n, :out_features]


def init_params(layer_sizes, key):
    """Deterministic Linear params; weights stored as (in, out)."""
    params = []
    for in_size, out_size in zip(layer_sizes[:-1], layer_sizes[1:]):
        key, kw, kb = jax.random.split(key, 3)
        bound = 1.0 / jnp.sqrt(in_size)  # matches nn.Linear's uniform bound
        w = jax.random.uniform(kw, (in_size, out_size), jnp.float32, -bound, bound)
        b = jax.random.uniform(kb, (out_size,), jnp.float32, -bound, bound)
        params.append((w, b))
    return params


def reference_forward(x_nchw, params):
    n = x_nchw.shape[0]
    x = jnp.maximum(x_nchw.reshape(n, -1), 0.0)
    for idx, (w, b) in enumerate(params):
        x = x @ w + b
        if idx != len(params) - 1:
            x = jnp.maximum(x, 0.0)
    return x


if __name__ == "__main__":
    key = jax.random.PRNGKey(0)
    k_in, k_params = jax.random.split(key)

    # Small shapes: batch=2, channels=4, spatial=8x8 -> flatten dim 256.
    batch, c, h, w = 2, 4, 8, 8
    x = jax.random.normal(k_in, (batch, c, h, w), jnp.float32)

    layer_sizes = [c * h * w, 128, 64, 1]  # value-net style MLP
    params = init_params(layer_sizes, k_params)

    out = network_forward(x, params)  # compute_dtype=jnp.bfloat16 on v6e/v7x
    out = jax.block_until_ready(out)

    ref = reference_forward(x, params)
    assert out.shape == (batch, layer_sizes[-1])
    assert jnp.allclose(out, ref, atol=1e-5, rtol=1e-5)

    print("KERNEL_OK")
</pallas_src>

<mosaic_0001>
module attributes {stable_mosaic.version = 11 : i64} {
  func.func @_fused_mlp_kernel(%arg0: i32, %arg1: memref<8x256xf32, #tpu.memory_space<vmem>>, %arg2: memref<256x128xf32, #tpu.memory_space<vmem>>, %arg3: memref<1x128xf32, #tpu.memory_space<vmem>>, %arg4: memref<128x64xf32, #tpu.memory_space<vmem>>, %arg5: memref<1x64xf32, #tpu.memory_space<vmem>>, %arg6: memref<64x128xf32, #tpu.memory_space<vmem>>, %arg7: memref<1x128xf32, #tpu.memory_space<vmem>>, %arg8: memref<8x128xf32, #tpu.memory_space<vmem>>) attributes {dimension_semantics = [#tpu.dimension_semantics<parallel>], iteration_bounds = array<i64: 1>, scalar_prefetch = 0 : i64, scratch_operands = 0 : i64, tpu.core_type = #tpu.core_type<tc>, window_params = [{transform_indices = @transform_0, window_bounds = array<i64: 8, 256>}, {pipeline_mode = #tpu.pipeline_mode<synchronous>, transform_indices = @transform_1, window_bounds = array<i64: 256, 128>}, {pipeline_mode = #tpu.pipeline_mode<synchronous>, transform_indices = @transform_2, window_bounds = array<i64: 1, 128>}, {pipeline_mode = #tpu.pipeline_mode<synchronous>, transform_indices = @transform_3, window_bounds = array<i64: 128, 64>}, {pipeline_mode = #tpu.pipeline_mode<synchronous>, transform_indices = @transform_4, window_bounds = array<i64: 1, 64>}, {pipeline_mode = #tpu.pipeline_mode<synchronous>, transform_indices = @transform_5, window_bounds = array<i64: 64, 128>}, {pipeline_mode = #tpu.pipeline_mode<synchronous>, transform_indices = @transform_6, window_bounds = array<i64: 1, 128>}, {transform_indices = @transform_7, window_bounds = array<i64: 8, 128>}]} {
    %c0 = arith.constant 0 : index
    %c0_0 = arith.constant 0 : index
    %0 = vector.load %arg1[%c0, %c0_0] : memref<8x256xf32, #tpu.memory_space<vmem>>, vector<8x256xf32>
    %cst = arith.constant 0.000000e+00 : f32
    %1 = vector.broadcast %cst : f32 to vector<8x256xf32>
    %2 = arith.maximumf %0, %1 : vector<8x256xf32>
    %c0_1 = arith.constant 0 : index
    %c0_2 = arith.constant 0 : index
    %3 = vector.load %arg2[%c0_1, %c0_2] : memref<256x128xf32, #tpu.memory_space<vmem>>, vector<256x128xf32>
    %c0_3 = arith.constant 0 : index
    %c0_4 = arith.constant 0 : index
    %4 = vector.load %arg3[%c0_3, %c0_4] : memref<1x128xf32, #tpu.memory_space<vmem>>, vector<1x128xf32>
    %cst_5 = arith.constant dense<0.000000e+00> : vector<8x128xf32>
    %5 = tpu.matmul %2, %3, %cst_5 {dimension_numbers = #tpu.dot_dimension_numbers<[1], [0], [0], [1], [0, 0, 1, 1], [], []>} : vector<8x256xf32>, vector<256x128xf32>, vector<8x128xf32> -> vector<8x128xf32>
    %6 = vector.broadcast %4 : vector<1x128xf32> to vector<8x128xf32>
    %7 = arith.addf %5, %6 : vector<8x128xf32>
    %cst_6 = arith.constant 0.000000e+00 : f32
    %8 = vector.broadcast %cst_6 : f32 to vector<8x128xf32>
    %9 = arith.maximumf %7, %8 : vector<8x128xf32>
    %c0_7 = arith.constant 0 : index
    %c0_8 = arith.constant 0 : index
    %10 = vector.load %arg4[%c0_7, %c0_8] : memref<128x64xf32, #tpu.memory_space<vmem>>, vector<128x64xf32>
    %c0_9 = arith.constant 0 : index
    %c0_10 = arith.constant 0 : index
    %11 = vector.load %arg5[%c0_9, %c0_10] : memref<1x64xf32, #tpu.memory_space<vmem>>, vector<1x64xf32>
    %cst_11 = arith.constant dense<0.000000e+00> : vector<8x64xf32>
    %12 = tpu.matmul %9, %10, %cst_11 {dimension_numbers = #tpu.dot_dimension_numbers<[1], [0], [0], [1], [0, 0, 1, 1], [], []>} : vector<8x128xf32>, vector<128x64xf32>, vector<8x64xf32> -> vector<8x64xf32>
    %13 = vector.broadcast %11 : vector<1x64xf32> to vector<8x64xf32>
    %14 = arith.addf %12, %13 : vector<8x64xf32>
    %cst_12 = arith.constant 0.000000e+00 : f32
    %15 = vector.broadcast %cst_12 : f32 to vector<8x64xf32>
    %16 = arith.maximumf %14, %15 : vector<8x64xf32>
    %c0_13 = arith.constant 0 : index
    %c0_14 = arith.constant 0 : index
    %17 = vector.load %arg6[%c0_13, %c0_14] : memref<64x128xf32, #tpu.memory_space<vmem>>, vector<64x128xf32>
    %c0_15 = arith.constant 0 : index
    %c0_16 = arith.constant 0 : index
    %18 = vector.load %arg7[%c0_15, %c0_16] : memref<1x128xf32, #tpu.memory_space<vmem>>, vector<1x128xf32>
    %cst_17 = arith.constant dense<0.000000e+00> : vector<8x128xf32>
    %19 = tpu.matmul %16, %17, %cst_17 {dimension_numbers = #tpu.dot_dimension_numbers<[1], [0], [0], [1], [0, 0, 1, 1], [], []>} : vector<8x64xf32>, vector<64x128xf32>, vector<8x128xf32> -> vector<8x128xf32>
    %20 = vector.broadcast %18 : vector<1x128xf32> to vector<8x128xf32>
    %21 = arith.addf %19, %20 : vector<8x128xf32>
    %c0_18 = arith.constant 0 : index
    %c0_19 = arith.constant 0 : index
    %22 = vector.load %arg8[%c0_18, %c0_19] : memref<8x128xf32, #tpu.memory_space<vmem>>, vector<8x128xf32>
    tpu.vector_store %arg8[%c0_18, %c0_19], %21 {strides = array<i32>} : memref<8x128xf32, #tpu.memory_space<vmem>>, vector<8x128xf32>,
    return
  }
  func.func @transform_0(%arg0: i32) -> (i32, i32) {
    %c0_i32 = arith.constant 0 : i32
    %c0_i32_0 = arith.constant 0 : i32
    return %arg0, %c0_i32 : i32, i32
  }
  func.func @transform_1(%arg0: i32) -> (i32, i32) {
    %c0_i32 = arith.constant 0 : i32
    %c0_i32_0 = arith.constant 0 : i32
    %c0_i32_1 = arith.constant 0 : i32
    return %c0_i32, %c0_i32_0 : i32, i32
  }
  func.func @transform_2(%arg0: i32) -> (i32, i32) {
    %c0_i32 = arith.constant 0 : i32
    %c0_i32_0 = arith.constant 0 : i32
    %c0_i32_1 = arith.constant 0 : i32
    return %c0_i32, %c0_i32_0 : i32, i32
  }
  func.func @transform_3(%arg0: i32) -> (i32, i32) {
    %c0_i32 = arith.constant 0 : i32
    %c0_i32_0 = arith.constant 0 : i32
    %c0_i32_1 = arith.constant 0 : i32
    return %c0_i32, %c0_i32_0 : i32, i32
  }
  func.func @transform_4(%arg0: i32) -> (i32, i32) {
    %c0_i32 = arith.constant 0 : i32
    %c0_i32_0 = arith.constant 0 : i32
    %c0_i32_1 = arith.constant 0 : i32
    return %c0_i32, %c0_i32_0 : i32, i32
  }
  func.func @transform_5(%arg0: i32) -> (i32, i32) {
    %c0_i32 = arith.constant 0 : i32
    %c0_i32_0 = arith.constant 0 : i32
    %c0_i32_1 = arith.constant 0 : i32
    return %c0_i32, %c0_i32_0 : i32, i32
  }
  func.func @transform_6(%arg0: i32) -> (i32, i32) {
    %c0_i32 = arith.constant 0 : i32
    %c0_i32_0 = arith.constant 0 : i32
    %c0_i32_1 = arith.constant 0 : i32
    return %c0_i32, %c0_i32_0 : i32, i32
  }
  func.func @transform_7(%arg0: i32) -> (i32, i32) {
    %c0_i32 = arith.constant 0 : i32
    %c0_i32_0 = arith.constant 0 : i32
    return %arg0, %c0_i32 : i32, i32
  }
}

</mosaic_0001>

<bundles_post_ra>
// kernel: tpu_custom_call.1
= control target key start
LH: loop header
LB: loop body
LE: loop exit
PB: predicated region body
PF: predicated region fallthrough
CT: control target
= control target key end

     0   :  { %12 = vsyncpa [#allocation3], 0  ;;  %s416_s0 = inlined_call_operand.vmem [shape: f32[8,256], index: 0, kind: input, shape index: {}]   ;;  %s417_s1 = inlined_call_operand.hbm [shape: f32[256,128], index: 1, kind: input, shape index: {}]   ;;  %s418_s2 = inlined_call_operand.vmem [shape: f32[1,128], index: 2, kind: input, shape index: {}]   ;;  %s419_s3 = inlined_call_operand.vmem [shape: f32[128,64], index: 3, kind: input, shape index: {}]   ;;  %s420_s4 = inlined_call_operand.vmem [shape: f32[1,64], index: 4, kind: input, shape index: {}]   ;;  %s421_s5 = inlined_call_operand.vmem [shape: f32[64,128], index: 5, kind: input, shape index: {}]   ;;  %s422_s6 = inlined_call_operand.vmem [shape: f32[1,128], index: 6, kind: input, shape index: {}]   ;;  %s423_s7 = inlined_call_operand.hbm [shape: f32[8,128], index: 7, kind: output, shape index: {}]  }
   0x1   :  { %13 = vsyncpa [#allocation4], 0  ;;  %s20_s26 = sshll.u32 %s417_s1, 4  ;;  %s279_s27 = smov [#allocation2]   ;;  %s21_s26 = int_to_ptr.hbm [resolvable:$true] %s20_s26 }
   0x2   :  { %s22_s28 = sshll.u32 %s279_s27, 4  ;;  %s280_s29 = smov 128   ;;  %s23_s28 = int_to_ptr.vmem [resolvable:$true] %s22_s28 }
   0x3   :  { %s281_s30 = smov 8  }
   0x4   :  { %28 = dma.hbm_to_vmem [thread:$0]  %s21_s26, 4096, %s23_s28, [#allocation3], %s280_s29, %s280_s29, %s281_s30  }
   0x5   :  { %275 = dma.done.wait [#allocation3], 4096  }
   0x6   :  { %276 = vsyncadd [#allocation3], 4294963200  ;;  %v62_v0 = vld [vmem:[#allocation2 + $0x78] sm:$0xff]  ;;  %v61_v1 = vld [vmem:[#allocation2 + $0x70] sm:$0xff]  ;;  %vm177_vm0 = vcmask 523264   ;;  %s282_s13 = smov [#allocation5]  }
   0x7   :  { %v78_v2 = vld [vmem:[#allocation2 + $0xf8] sm:$0xff]  ;;  %83 = vmatpush.msra.mxu0 %v62_v0  ;;  %v77_v3 = vld [vmem:[#allocation2 + $0xf0] sm:$0xff]  ;;  %v60_v4 = vld [vmem:[#allocation2 + $0x68] sm:$0xff]  ;;  %s207_s14 = sshll.u32 %s282_s13, 4  ;;  %s208_s14 = int_to_ptr.vmem [resolvable:$true] %s207_s14 }
   0x8   :  { %103 = vmatpush.msra.mxu1 %v78_v2  ;;  %v76_v5 = vld [vmem:[#allocation2 + $0xe8] sm:$0xff]  ;;  %v59_v6 = vld [vmem:[#allocation2 + $0x60] sm:$0xff]  ;;  %v58_v8 = vld [vmem:[#allocation2 + $0x58] sm:$0xff] }
   0x9   :  { %84 = vmatpush.msra.mxu0 %v61_v1  ;;  %v75_v7 = vld [vmem:[#allocation2 + $0xe0] sm:$0xff]  ;;  %v74_v9 = vld [vmem:[#allocation2 + $0xd8] sm:$0xff]  ;;  %v57_v10 = vld [vmem:[#allocation2 + $0x50] sm:$0xff] }
   0xa   :  { %104 = vmatpush.msra.mxu1 %v77_v3  ;;  %v73_v11 = vld [vmem:[#allocation2 + $0xd0] sm:$0xff]  ;;  %v56_v12 = vld [vmem:[#allocation2 + $0x48] sm:$0xff]  ;;  %v139_v14 = vld [vmem:[%s419_s3 + $0x78] sm:$0xff] }
   0xb   :  { %85 = vmatpush.msra.mxu0 %v60_v4  ;;  %v72_v13 = vld [vmem:[#allocation2 + $0xc8] sm:$0xff]  ;;  %v138_v15 = vld [vmem:[%s419_s3 + $0x70] sm:$0xff]  ;;  %v55_v16 = vld [vmem:[#allocation2 + $0x40] sm:$0xff]  ;;  %144 = vmatpush.msra.mxu2 %v139_v14 }
   0xc   :  { %105 = vmatpush.msra.mxu1 %v76_v5  ;;  %v71_v17 = vld [vmem:[#allocation2 + $0xc0] sm:$0xff]  ;;  %v137_v18 = vld [vmem:[%s419_s3 + $0x68] sm:$0xff]  ;;  %v54_v19 = vld [vmem:[#allocation2 + $0x38] sm:$0xff] }
   0xd   :  { %86 = vmatpush.msra.mxu0 %v59_v6  ;;  %v70_v20 = vld [vmem:[#allocation2 + $0xb8] sm:$0xff]  ;;  %145 = vmatpush.msra.mxu2 %v138_v15  ;;  %v53_v21 = vld [vmem:[#allocation2 + $0x30] sm:$0xff]  ;;  %v136_v22 = vld [vmem:[%s419_s3 + $0x60] sm:$0xff] }
   0xe   :  { %106 = vmatpush.msra.mxu1 %v75_v7  ;;  %v69_v23 = vld [vmem:[#allocation2 + $0xb0] sm:$0xff]  ;;  %v135_v24 = vld [vmem:[%s419_s3 + $0x58] sm:$0xff]  ;;  %v52_v25 = vld [vmem:[#allocation2 + $0x28] sm:$0xff] }
   0xf   :  { %87 = vmatpush.msra.mxu0 %v58_v8  ;;  %146 = vmatpush.msra.mxu2 %v137_v18  ;;  %v68_v26 = vld [vmem:[#allocation2 + $0xa8] sm:$0xff]  ;;  %v134_v27 = vld [vmem:[%s419_s3 + $0x50] sm:$0xff]  ;;  %v51_v28 = vld [vmem:[#allocation2 + $0x20] sm:$0xff] }
  0x10   :  { %107 = vmatpush.msra.mxu1 %v74_v9  ;;  %v67_v29 = vld [vmem:[#allocation2 + $0xa0] sm:$0xff]  ;;  %v133_v30 = vld [vmem:[%s419_s3 + $0x48] sm:$0xff]  ;;  %v50_v31 = vld [vmem:[#allocation2 + $0x18] sm:$0xff] }
  0x11   :  { %88 = vmatpush.msra.mxu0 %v57_v10  ;;  %147 = vmatpush.msra.mxu2 %v136_v22  ;;  %v66_v32 = vld [vmem:[#allocation2 + $0x98] sm:$0xff]  ;;  %v132_v33 = vld [vmem:[%s419_s3 + $0x40] sm:$0xff]  ;;  %v49_v34 = vld [vmem:[#allocation2 + $0x10] sm:$0xff] }
  0x12   :  { %108 = vmatpush.msra.mxu1 %v73_v11  ;;  %v65_v35 = vld [vmem:[#allocation2 + $0x90] sm:$0xff]  ;;  %v43_v36 = vld [vmem:[%s416_s0] sm:$0xff]  ;;  %v44_v37 = vld [vmem:[%s416_s0 + $0x8] sm:$0xff] }
  0x13   :  { %89 = vmatpush.msra.mxu0 %v56_v12  ;;  %148 = vmatpush.msra.mxu2 %v135_v24  ;;  %v131_v38 = vld [vmem:[%s419_s3 + $0x38] sm:$0xff]  ;;  %v48_v39 = vld [vmem:[#allocation2 + $0x8] sm:$0xff]  ;;  %v130_v41 = vld [vmem:[%s419_s3 + $0x30] sm:$0xff]  ;;  %v45_v43 = vmax.f32 %v43_v36, 0.0  ;;  %v46_v45 = vmax.f32 %v44_v37, 0.0 }
  0x14   :  { %109 = vmatpush.msra.mxu1 %v72_v13  ;;  %v64_v40 = vld [vmem:[#allocation2 + $0x88] sm:$0xff]  ;;  %v47_v42 = vld [vmem:[#allocation2] sm:$0xff]  ;;  %v127_v48 = vld [vmem:[%s419_s3 + $0x18] sm:$0xff] }
  0x15   :  { %90 = vmatpush.msra.mxu0 %v55_v16  ;;  %149 = vmatpush.msra.mxu2 %v134_v27  ;;  %v63_v44 = vld [vmem:[#allocation2 + $0x80] sm:$0xff]  ;;  %v129_v46 = vld [vmem:[%s419_s3 + $0x28] sm:$0xff]  ;;  %v126_v49 = vld [vmem:[%s419_s3 + $0x10] sm:$0xff] }
  0x16   :  { %110 = vmatpush.msra.mxu1 %v71_v17  ;;  %v128_v47 = vld [vmem:[%s419_s3 + $0x20] sm:$0xff]  ;;  %v125_v50 = vld [vmem:[%s419_s3 + $0x8] sm:$0xff]  ;;  %v172_v52 = vld [vmem:[%s421_s5 + $0x38] sm:$0xff] }
  0x17   :  { %91 = vmatpush.msra.mxu0 %v54_v19  ;;  %150 = vmatpush.msra.mxu2 %v133_v30  ;;  %v124_v51 = vld [vmem:[%s419_s3] sm:$0xff]  ;;  %v171_v53 = vld [vmem:[%s421_s5 + $0x30] sm:$0xff]  ;;  %v170_v54 = vld [vmem:[%s421_s5 + $0x28] sm:$0xff] }
  0x18   :  { %111 = vmatpush.msra.mxu1 %v70_v20  ;;  %189 = vmatpush.msra.mxu3 %v172_v52  ;;  %v169_v55 = vld [vmem:[%s421_s5 + $0x20] sm:$0xff]  ;;  %v168_v56 = vld [vmem:[%s421_s5 + $0x18] sm:$0xff]  ;;  %v167_v63 = vld [vmem:[%s421_s5 + $0x10] sm:$0xff] }
  0x19   :  { %92 = vmatpush.msra.mxu0 %v53_v21  ;;  %151 = vmatpush.msra.mxu2 %v132_v33  ;;  %v224_v57 = vld [vmem:[%s418_s2] ss:$0 sm:$0xff]  ;;  %v166_v0 = vld [vmem:[%s421_s5 + $0x8] sm:$0xff] }
  0x1a   :  { %112 = vmatpush.msra.mxu1 %v69_v23  ;;  %190 = vmatpush.msra.mxu3 %v171_v53  ;;  %v165_v1 = vld [vmem:[%s421_s5] sm:$0xff]  ;;  %s209_s5 = sshll.u32 %s423_s7, 4  ;;  %s210_s5 = int_to_ptr.hbm [resolvable:$true] %s209_s5 }
  0x1b   :  { %93 = vmatpush.msra.mxu0 %v52_v25  ;;  %152 = vmatpush.msra.mxu2 %v131_v38  ;;  %v225_v2 = vld [vmem:[%s420_s4] ss:$0 sm:$0xff] }
  0x1c   :  { %113 = vmatpush.msra.mxu1 %v68_v26  ;;  %191 = vmatpush.msra.mxu3 %v170_v54  ;;  %v226_v6 = vld [vmem:[%s422_s6] ss:$0 sm:$0xff] }
  0x1d   :  { %94 = vmatpush.msra.mxu0 %v51_v28  ;;  %153 = vmatpush.msra.mxu2 %v130_v41 }
  0x1e   :  { %114 = vmatpush.msra.mxu1 %v67_v29  ;;  %192 = vmatpush.msra.mxu3 %v169_v55 }
  0x1f   :  { %95 = vmatpush.msra.mxu0 %v50_v31  ;;  %154 = vmatpush.msra.mxu2 %v129_v46 }
  0x20   :  { %115 = vmatpush.msra.mxu1 %v66_v32  ;;  %193 = vmatpush.msra.mxu3 %v168_v56 }
  0x21   :  { %96 = vmatpush.msra.mxu0 %v49_v34  ;;  %155 = vmatpush.msra.mxu2 %v128_v47 }
  0x22   :  { %116 = vmatpush.msra.mxu1 %v65_v35  ;;  %194 = vmatpush.msra.mxu3 %v167_v63 }
  0x23   :  { %97 = vmatpush.msra.mxu0 %v48_v39  ;;  %156 = vmatpush.msra.mxu2 %v127_v48 }
  0x24   :  { %117 = vmatpush.msra.mxu1 %v64_v40  ;;  %195 = vmatpush.msra.mxu3 %v166_v0 }
  0x25   :  { %98 = vmatpush.msra.mxu0 %v47_v42  ;;  %157 = vmatpush.msra.mxu2 %v126_v49 }
  0x26   :  { %118 = vmatpush.msra.mxu1 %v63_v44  ;;  %99 = vmatmul.f32.vlgmr.msra.gmra.mxu0 %v45_v43 }
  0x27   :  { %119 = vmatmul.f32.vlgmr.msra.gmra.mxu1 %v46_v45  ;;  %158 = vmatpush.msra.mxu2 %v125_v50 }
  0x28   :  { %196 = vmatpush.msra.mxu3 %v165_v1 }
  0x29   :  { %159 = vmatpush.msra.mxu2 %v124_v51 }
  0xa3   :  { %v100_v58 = vpop.f32.mrf.mxu0 }
  0xa4   :  { %v120_v59 = vpop.f32.mrf.mxu1  ;;  %v101_v60 = vadd.f32 %v224_v57, %v100_v58 }
  0xa6   :  { %v121_v61 = vadd.f32 %v120_v59, %v101_v60 }
  0xa8   :  { %v123_v62 = vmax.f32 %v121_v61, 0.0 }
  0xaa   :  { %160 = vmatmul.f32.vlgmr.msra.gmra.mxu2 %v123_v62 }
 0x12d   :  { %v161_v3 = vpop.f32.mrf.mxu2 }
 0x12e   :  { %v162_v4 = vadd.f32 %v225_v2, %v161_v3 }
 0x130   :  { %v164_v5 = vmax.f32 %v162_v4, 0.0 }
 0x132   :  { %219 = vmatmul.msk.f32.vlgmr.msra.gmra.mxu3 %vm177_vm0, %v164_v5 }
 0x1b5   :  { %v198_v7 = vpop.f32.mrf.mxu3 }
 0x1b6   :  { %v199_v8 = vadd.f32 %v226_v6, %v198_v7 }
 0x1b8   :  { %201 = vst [vmem:[#allocation5] sm:$0xff] %v199_v8 }
 0x1b9   :  { %212 = dma.vmem_to_hbm [thread:$0]  %s208_s14, 128, %s210_s5, [#allocation4]  }
 0x1ba   :  { %277 = dma.done.wait [#allocation4], 128  }
 0x1bb   :  { %278 = vsyncadd [#allocation4], 4294967168 }
 0x1bc   :  { %217 = vsyncpa [#allocation3], 1 }
 0x1bd   :  { %218 = vsyncpa [#allocation4], 1 }

</bundles_post_ra>
